<compile_context>
chip_gen: v6e
topology: v6e:2x2x1
jax: 0.10.0
libtpu: 0.0.40
codegen_flags: <defaults>
</compile_context>

<pallas_src>
import functools

import jax
import jax.numpy as jnp
from jax.experimental import pallas as pl
from jax.experimental.pallas import tpu as pltpu

_EPS = 1e-5
_LANE = 128

_VMEM_SPEC = pl.BlockSpec(memory_space=pltpu.MemorySpace.VMEM)


# ----------------------------- math helpers ----------------------------------


def _elu(h):
    # ELU(alpha=1): x if x > 0 else exp(x) - 1.
    # (exp(min(h,0)) - 1 rather than expm1: expm1 has no guaranteed Mosaic lowering;
    #  the extra VPU subtract is negligible.)
    return jnp.where(h > 0, h, jnp.exp(jnp.minimum(h, 0.0)) - 1.0)


def _bn(h, gamma, beta):
    # nn.BatchNorm1d training mode: biased batch statistics over the batch axis,
    # computed in one pass (E[x], E[x^2]) -> single pair of sublane reductions.
    mu = jnp.mean(h, axis=0, keepdims=True)
    ex2 = jnp.mean(h * h, axis=0, keepdims=True)
    var = jnp.maximum(ex2 - mu * mu, 0.0)
    return (h - mu) * jax.lax.rsqrt(var + _EPS) * gamma + beta


def _mxu_linear(h, w, b):
    # bf16 operands on the MXU, f32 accumulate, f32 bias add.
    return (
        jnp.dot(h.astype(jnp.bfloat16), w.astype(jnp.bfloat16),
                preferred_element_type=jnp.float32)
        + b
    )


# ------------------------------- fused kernel --------------------------------


def make_fused_kernel(plan):
    """plan: tuple of ('linear', w_idx, b_row) / ('block', w1_idx, w2_idx, v_row) ops,
    consumed in forward order.  All indices are static Python ints."""

    def kernel(x_ref, w_ref, v_ref, o_ref):
        h = x_ref[...]                                   # [B, P] f32, stays resident
        for op in plan:
            if op[0] == "linear":
                _, wi, br = op
                h = _mxu_linear(h, w_ref[wi], v_ref[br : br + 1, :])
            else:  # residual block
                _, w1i, w2i, vr = op
                g1 = v_ref[vr + 0 : vr + 1, :]
                be1 = v_ref[vr + 1 : vr + 2, :]
                b1 = v_ref[vr + 2 : vr + 3, :]
                g2 = v_ref[vr + 3 : vr + 4, :]
                be2 = v_ref[vr + 4 : vr + 5, :]
                b2 = v_ref[vr + 5 : vr + 6, :]

                t = _elu(_bn(h, g1, be1))
                t = _mxu_linear(t, w_ref[w1i], b1)
                t = _elu(_bn(t, g2, be2))
                # Dropout(p=0.0) is the identity.
                t = _mxu_linear(t, w_ref[w2i], b2)
                h = h + t                                # skip connection
        o_ref[...] = h

    return kernel


# --------------------------- packing / wrapper --------------------------------


def _round_up(n, m):
    return ((n + m - 1) // m) * m


def _pad2(w, p):
    return jnp.zeros((p, p), w.dtype).at[: w.shape[0], : w.shape[1]].set(w)


def _pad1(v, p):
    return jnp.zeros((p,), v.dtype).at[: v.shape[0]].set(v)


def build_fused(params):
    """Flatten the network into (plan, bf16 weight stack [nW,P,P], f32 vec stack [nV,P], P)."""
    layers = [("linear", params["stage1"]), ("linear", params["resnet"]["input_layer"])]
    for bp, rp in zip(params["resnet"]["blocks"], params["resnet"]["resizes"]):
        layers.append(("block", bp))
        if rp is not None:
            layers.append(("linear", rp))

    max_dim = 0
    for kind, p in layers:
        if kind == "linear":
            max_dim = max(max_dim, p[0].shape[0], p[0].shape[1])
        else:
            max_dim = max(max_dim, p["w1"].shape[0])
    pad = _round_up(max_dim, _LANE)                      # lane-dense feature dimension

    plan, w_list, v_rows = [], [], []
    for kind, p in layers:
        if kind == "linear":
            w, b = p
            plan.append(("linear", len(w_list), len(v_rows)))
            w_list.append(_pad2(w, pad))
            v_rows.append(_pad1(b, pad))
        else:
            plan.append(("block", len(w_list), len(w_list) + 1, len(v_rows)))
            w_list.append(_pad2(p["w1"], pad))
            w_list.append(_pad2(p["w2"], pad))
            for name in ("gamma1", "beta1", "b1", "gamma2", "beta2", "b2"):
                v_rows.append(_pad1(p[name], pad))

    w_stack = jnp.stack(w_list).astype(jnp.bfloat16)     # one DMA for all matrices
    n_rows = _round_up(len(v_rows), 8)
    v_stack = (
        jnp.zeros((n_rows, pad), jnp.float32).at[: len(v_rows)].set(jnp.stack(v_rows))
    )                                                    # one DMA for all 1-D params
    return tuple(plan), w_stack, v_stack, pad


def two_stage_embedding_forward(params, x, out_dim):
    plan, w_stack, v_stack, pad = build_fused(params)
    b, d_in = x.shape
    x_p = jnp.zeros((b, pad), jnp.float32).at[:, :d_in].set(x)

    out_p = pl.pallas_call(
        make_fused_kernel(plan),
        out_shape=jax.ShapeDtypeStruct((b, pad), jnp.float32),
        in_specs=[_VMEM_SPEC, _VMEM_SPEC, _VMEM_SPEC],
        out_specs=_VMEM_SPEC,
    )(x_p, w_stack, v_stack)
    return out_p[:, :out_dim]


# --------------------------- parameter construction ---------------------------


def init_linear(key, in_dim, out_dim):
    # Mimic PyTorch Linear default init (uniform +/- 1/sqrt(fan_in)); stored [in, out].
    kw, kb = jax.random.split(key)
    bound = 1.0 / jnp.sqrt(jnp.float32(in_dim))
    w = jax.random.uniform(kw, (in_dim, out_dim), jnp.float32, -bound, bound)
    b = jax.random.uniform(kb, (out_dim,), jnp.float32, -bound, bound)
    return w, b


def init_residual_block(key, features):
    k1, k2 = jax.random.split(key)
    w1, b1 = init_linear(k1, features, features)
    w2, b2 = init_linear(k2, features, features)
    return {
        "gamma1": jnp.ones((features,), jnp.float32),
        "beta1": jnp.zeros((features,), jnp.float32),
        "w1": w1, "b1": b1,
        "gamma2": jnp.ones((features,), jnp.float32),
        "beta2": jnp.zeros((features,), jnp.float32),
        "w2": w2, "b2": b2,
    }


def init_fc_resnet(key, input_dim, output_dim, hidden_dims):
    keys = jax.random.split(key, 2 * len(hidden_dims) + 2)
    params = {"input_layer": init_linear(keys[0], input_dim, hidden_dims[0])}
    blocks, resizes = [], []
    for i, hd in enumerate(hidden_dims):
        blocks.append(init_residual_block(keys[1 + i], hd))
        if i < len(hidden_dims) - 1:
            if hd != hidden_dims[i + 1]:
                resizes.append(init_linear(keys[1 + len(hidden_dims) + i], hd, hidden_dims[i + 1]))
            else:
                resizes.append(None)  # nn.Identity
    resizes.append(init_linear(keys[-1], hidden_dims[-1], output_dim))
    params["blocks"] = blocks
    params["resizes"] = resizes
    return params


def init_two_stage_embedding_net(key, stage_1_input_dim, unaugmented_data, n_comp,
                                 output_dim, hidden_dims):
    # Stage-1 Linear(stage_1_input_dim, n_comp) initialized with the SVD of the data:
    # weight[:, :D] = Vt[:n_comp], bias = 0  (done once at init time via jnp.linalg.svd).
    _, _, vt = jnp.linalg.svd(unaugmented_data, full_matrices=False)
    d = unaugmented_data.shape[-1]
    w_pt = jnp.zeros((n_comp, stage_1_input_dim), jnp.float32)   # PyTorch [out, in] layout
    w_pt = w_pt.at[:, :d].set(vt[:n_comp])
    stage1 = (w_pt.T, jnp.zeros((n_comp,), jnp.float32))         # stored [in, out]
    # Stage 2: FullyConnectedResNet(n_comp, output_dim, hidden_dims).
    resnet = init_fc_resnet(key, n_comp, output_dim, hidden_dims)
    return {"stage1": stage1, "resnet": resnet}


# ------------------------------ pure-JAX reference ----------------------------


def reference_forward(params, x):
    h = _mxu_linear(x, *params["stage1"])
    r = params["resnet"]
    h = _mxu_linear(h, *r["input_layer"])
    for bp, rp in zip(r["blocks"], r["resizes"]):
        t = _elu(_bn(h, bp["gamma1"], bp["beta1"]))
        t = _mxu_linear(t, bp["w1"], bp["b1"])
        t = _elu(_bn(t, bp["gamma2"], bp["beta2"]))
        t = _mxu_linear(t, bp["w2"], bp["b2"])
        h = h + t
        if rp is not None:
            h = _mxu_linear(h, *rp)
    return h


# ------------------------------------ main ------------------------------------

if __name__ == "__main__":
    batch = 8
    stage_1_input_dim = 16
    data_samples, data_features = 32, 12     # unaugmented_data: [32, 12]
    n_comp = 8                               # stage_2_args[0]
    hidden_dims = (32, 64)
    output_dim = 8

    key = jax.random.PRNGKey(0)
    k_data, k_params, k_x = jax.random.split(key, 3)

    unaugmented_data = jax.random.normal(k_data, (data_samples, data_features), jnp.float32)
    params = init_two_stage_embedding_net(
        k_params, stage_1_input_dim, unaugmented_data, n_comp, output_dim, hidden_dims)
    x = jax.random.normal(k_x, (batch, stage_1_input_dim), jnp.float32)

    fwd = jax.jit(functools.partial(two_stage_embedding_forward, params, out_dim=output_dim))
    out = fwd(x)
    jax.block_until_ready(out)

    ref = reference_forward(params, x)
    assert out.shape == (batch, output_dim), out.shape
    assert out.dtype == jnp.float32
    assert bool(jnp.all(jnp.isfinite(out)))
    assert bool(jnp.allclose(out, ref, atol=1e-3, rtol=1e-3)), float(jnp.max(jnp.abs(out - ref)))
    print("KERNEL_OK")
</pallas_src>

<mosaic_0001>
module attributes {stable_mosaic.version = 11 : i64} {
  func.func @kernel(%arg0: memref<8x128xf32, #tpu.memory_space<vmem>>, %arg1: memref<8x128x128xbf16, #tpu.memory_space<vmem>>, %arg2: memref<16x128xf32, #tpu.memory_space<vmem>>, %arg3: memref<8x128xf32, #tpu.memory_space<vmem>>) attributes {dimension_semantics = [], scalar_prefetch = 0 : i64, scratch_operands = 0 : i64, tpu.core_type = #tpu.core_type<tc>} {
    %c0 = arith.constant 0 : index
    %c0_0 = arith.constant 0 : index
    %0 = vector.load %arg0[%c0, %c0_0] : memref<8x128xf32, #tpu.memory_space<vmem>>, vector<8x128xf32>
    %c0_1 = arith.constant 0 : index
    %c0_2 = arith.constant 0 : index
    %c0_3 = arith.constant 0 : index
    %1 = vector.load %arg1[%c0_1, %c0_2, %c0_3] : memref<8x128x128xbf16, #tpu.memory_space<vmem>>, vector<1x128x128xbf16>
    %2 = vector.shape_cast %1 : vector<1x128x128xbf16> to vector<128x128xbf16>
    %c0_4 = arith.constant 0 : index
    %c0_5 = arith.constant 0 : index
    %3 = vector.load %arg2[%c0_4, %c0_5] : memref<16x128xf32, #tpu.memory_space<vmem>>, vector<1x128xf32>
    %4 = arith.truncf %0 : vector<8x128xf32> to vector<8x128xbf16>
    %cst = arith.constant dense<0.000000e+00> : vector<8x128xf32>
    %5 = tpu.matmul %4, %2, %cst {dimension_numbers = #tpu.dot_dimension_numbers<[1], [0], [0], [1], [0, 0, 1, 1], [], []>} : vector<8x128xbf16>, vector<128x128xbf16>, vector<8x128xf32> -> vector<8x128xf32>
    %6 = vector.broadcast %3 : vector<1x128xf32> to vector<8x128xf32>
    %7 = arith.addf %5, %6 : vector<8x128xf32>
    %c1 = arith.constant 1 : index
    %c0_6 = arith.constant 0 : index
    %c0_7 = arith.constant 0 : index
    %8 = vector.load %arg1[%c1, %c0_6, %c0_7] : memref<8x128x128xbf16, #tpu.memory_space<vmem>>, vector<1x128x128xbf16>
    %9 = vector.shape_cast %8 : vector<1x128x128xbf16> to vector<128x128xbf16>
    %c1_8 = arith.constant 1 : index
    %c0_9 = arith.constant 0 : index
    %10 = vector.load %arg2[%c1_8, %c0_9] : memref<16x128xf32, #tpu.memory_space<vmem>>, vector<1x128xf32>
    %11 = arith.truncf %7 : vector<8x128xf32> to vector<8x128xbf16>
    %cst_10 = arith.constant dense<0.000000e+00> : vector<8x128xf32>
    %12 = tpu.matmul %11, %9, %cst_10 {dimension_numbers = #tpu.dot_dimension_numbers<[1], [0], [0], [1], [0, 0, 1, 1], [], []>} : vector<8x128xbf16>, vector<128x128xbf16>, vector<8x128xf32> -> vector<8x128xf32>
    %13 = vector.broadcast %10 : vector<1x128xf32> to vector<8x128xf32>
    %14 = arith.addf %12, %13 : vector<8x128xf32>
    %c2 = arith.constant 2 : index
    %c0_11 = arith.constant 0 : index
    %15 = vector.load %arg2[%c2, %c0_11] : memref<16x128xf32, #tpu.memory_space<vmem>>, vector<1x128xf32>
    %c3 = arith.constant 3 : index
    %c0_12 = arith.constant 0 : index
    %16 = vector.load %arg2[%c3, %c0_12] : memref<16x128xf32, #tpu.memory_space<vmem>>, vector<1x128xf32>
    %c4 = arith.constant 4 : index
    %c0_13 = arith.constant 0 : index
    %17 = vector.load %arg2[%c4, %c0_13] : memref<16x128xf32, #tpu.memory_space<vmem>>, vector<1x128xf32>
    %c5 = arith.constant 5 : index
    %c0_14 = arith.constant 0 : index
    %18 = vector.load %arg2[%c5, %c0_14] : memref<16x128xf32, #tpu.memory_space<vmem>>, vector<1x128xf32>
    %c6 = arith.constant 6 : index
    %c0_15 = arith.constant 0 : index
    %19 = vector.load %arg2[%c6, %c0_15] : memref<16x128xf32, #tpu.memory_space<vmem>>, vector<1x128xf32>
    %c7 = arith.constant 7 : index
    %c0_16 = arith.constant 0 : index
    %20 = vector.load %arg2[%c7, %c0_16] : memref<16x128xf32, #tpu.memory_space<vmem>>, vector<1x128xf32>
    %cst_17 = arith.constant dense<0.000000e+00> : vector<128xf32>
    %21 = vector.multi_reduction <add>, %14, %cst_17 [0] : vector<8x128xf32> to vector<128xf32>
    %22 = vector.shape_cast %21 : vector<128xf32> to vector<1x128xf32>
    %cst_18 = arith.constant 8.000000e+00 : f32
    %23 = vector.broadcast %cst_18 : f32 to vector<1x128xf32>
    %24 = arith.divf %22, %23 : vector<1x128xf32>
    %25 = arith.mulf %14, %14 : vector<8x128xf32>
    %cst_19 = arith.constant dense<0.000000e+00> : vector<128xf32>
    %26 = vector.multi_reduction <add>, %25, %cst_19 [0] : vector<8x128xf32> to vector<128xf32>
    %27 = vector.shape_cast %26 : vector<128xf32> to vector<1x128xf32>
    %cst_20 = arith.constant 8.000000e+00 : f32
    %28 = vector.broadcast %cst_20 : f32 to vector<1x128xf32>
    %29 = arith.divf %27, %28 : vector<1x128xf32>
    %30 = arith.mulf %24, %24 : vector<1x128xf32>
    %31 = arith.subf %29, %30 : vector<1x128xf32>
    %cst_21 = arith.constant 0.000000e+00 : f32
    %32 = vector.broadcast %cst_21 : f32 to vector<1x128xf32>
    %33 = arith.maximumf %31, %32 : vector<1x128xf32>
    %34 = vector.broadcast %24 : vector<1x128xf32> to vector<8x128xf32>
    %35 = arith.subf %14, %34 : vector<8x128xf32>
    %cst_22 = arith.constant 9.99999974E-6 : f32
    %36 = vector.broadcast %cst_22 : f32 to vector<1x128xf32>
    %37 = arith.addf %33, %36 : vector<1x128xf32>
    %38 = math.rsqrt %37 : vector<1x128xf32>
    %39 = vector.broadcast %38 : vector<1x128xf32> to vector<8x128xf32>
    %40 = arith.mulf %35, %39 : vector<8x128xf32>
    %41 = vector.broadcast %15 : vector<1x128xf32> to vector<8x128xf32>
    %42 = arith.mulf %40, %41 : vector<8x128xf32>
    %43 = vector.broadcast %16 : vector<1x128xf32> to vector<8x128xf32>
    %44 = arith.addf %42, %43 : vector<8x128xf32>
    %cst_23 = arith.constant 0.000000e+00 : f32
    %45 = vector.broadcast %cst_23 : f32 to vector<8x128xf32>
    %46 = arith.cmpf ogt, %44, %45 : vector<8x128xf32>
    %cst_24 = arith.constant 0.000000e+00 : f32
    %47 = vector.broadcast %cst_24 : f32 to vector<8x128xf32>
    %48 = arith.minimumf %44, %47 : vector<8x128xf32>
    %49 = math.exp %48 : vector<8x128xf32>
    %cst_25 = arith.constant 1.000000e+00 : f32
    %50 = vector.broadcast %cst_25 : f32 to vector<8x128xf32>
    %51 = arith.subf %49, %50 : vector<8x128xf32>
    %52 = arith.select %46, %44, %51 : vector<8x128xi1>, vector<8x128xf32>
    %c2_26 = arith.constant 2 : index
    %c0_27 = arith.constant 0 : index
    %c0_28 = arith.constant 0 : index
    %53 = vector.load %arg1[%c2_26, %c0_27, %c0_28] : memref<8x128x128xbf16, #tpu.memory_space<vmem>>, vector<1x128x128xbf16>
    %54 = vector.shape_cast %53 : vector<1x128x128xbf16> to vector<128x128xbf16>
    %55 = arith.truncf %52 : vector<8x128xf32> to vector<8x128xbf16>
    %cst_29 = arith.constant dense<0.000000e+00> : vector<8x128xf32>
    %56 = tpu.matmul %55, %54, %cst_29 {dimension_numbers = #tpu.dot_dimension_numbers<[1], [0], [0], [1], [0, 0, 1, 1], [], []>} : vector<8x128xbf16>, vector<128x128xbf16>, vector<8x128xf32> -> vector<8x128xf32>
    %57 = vector.broadcast %17 : vector<1x128xf32> to vector<8x128xf32>
    %58 = arith.addf %56, %57 : vector<8x128xf32>
    %cst_30 = arith.constant dense<0.000000e+00> : vector<128xf32>
    %59 = vector.multi_reduction <add>, %58, %cst_30 [0] : vector<8x128xf32> to vector<128xf32>
    %60 = vector.shape_cast %59 : vector<128xf32> to vector<1x128xf32>
    %cst_31 = arith.constant 8.000000e+00 : f32
    %61 = vector.broadcast %cst_31 : f32 to vector<1x128xf32>
    %62 = arith.divf %60, %61 : vector<1x128xf32>
    %63 = arith.mulf %58, %58 : vector<8x128xf32>
    %cst_32 = arith.constant dense<0.000000e+00> : vector<128xf32>
    %64 = vector.multi_reduction <add>, %63, %cst_32 [0] : vector<8x128xf32> to vector<128xf32>
    %65 = vector.shape_cast %64 : vector<128xf32> to vector<1x128xf32>
    %cst_33 = arith.constant 8.000000e+00 : f32
    %66 = vector.broadcast %cst_33 : f32 to vector<1x128xf32>
    %67 = arith.divf %65, %66 : vector<1x128xf32>
    %68 = arith.mulf %62, %62 : vector<1x128xf32>
    %69 = arith.subf %67, %68 : vector<1x128xf32>
    %cst_34 = arith.constant 0.000000e+00 : f32
    %70 = vector.broadcast %cst_34 : f32 to vector<1x128xf32>
    %71 = arith.maximumf %69, %70 : vector<1x128xf32>
    %72 = vector.broadcast %62 : vector<1x128xf32> to vector<8x128xf32>
    %73 = arith.subf %58, %72 : vector<8x128xf32>
    %cst_35 = arith.constant 9.99999974E-6 : f32
    %74 = vector.broadcast %cst_35 : f32 to vector<1x128xf32>
    %75 = arith.addf %71, %74 : vector<1x128xf32>
    %76 = math.rsqrt %75 : vector<1x128xf32>
    %77 = vector.broadcast %76 : vector<1x128xf32> to vector<8x128xf32>
    %78 = arith.mulf %73, %77 : vector<8x128xf32>
    %79 = vector.broadcast %18 : vector<1x128xf32> to vector<8x128xf32>
    %80 = arith.mulf %78, %79 : vector<8x128xf32>
    %81 = vector.broadcast %19 : vector<1x128xf32> to vector<8x128xf32>
    %82 = arith.addf %80, %81 : vector<8x128xf32>
    %cst_36 = arith.constant 0.000000e+00 : f32
    %83 = vector.broadcast %cst_36 : f32 to vector<8x128xf32>
    %84 = arith.cmpf ogt, %82, %83 : vector<8x128xf32>
    %cst_37 = arith.constant 0.000000e+00 : f32
    %85 = vector.broadcast %cst_37 : f32 to vector<8x128xf32>
    %86 = arith.minimumf %82, %85 : vector<8x128xf32>
    %87 = math.exp %86 : vector<8x128xf32>
    %cst_38 = arith.constant 1.000000e+00 : f32
    %88 = vector.broadcast %cst_38 : f32 to vector<8x128xf32>
    %89 = arith.subf %87, %88 : vector<8x128xf32>
    %90 = arith.select %84, %82, %89 : vector<8x128xi1>, vector<8x128xf32>
    %c3_39 = arith.constant 3 : index
    %c0_40 = arith.constant 0 : index
    %c0_41 = arith.constant 0 : index
    %91 = vector.load %arg1[%c3_39, %c0_40, %c0_41] : memref<8x128x128xbf16, #tpu.memory_space<vmem>>, vector<1x128x128xbf16>
    %92 = vector.shape_cast %91 : vector<1x128x128xbf16> to vector<128x128xbf16>
    %93 = arith.truncf %90 : vector<8x128xf32> to vector<8x128xbf16>
    %cst_42 = arith.constant dense<0.000000e+00> : vector<8x128xf32>
    %94 = tpu.matmul %93, %92, %cst_42 {dimension_numbers = #tpu.dot_dimension_numbers<[1], [0], [0], [1], [0, 0, 1, 1], [], []>} : vector<8x128xbf16>, vector<128x128xbf16>, vector<8x128xf32> -> vector<8x128xf32>
    %95 = vector.broadcast %20 : vector<1x128xf32> to vector<8x128xf32>
    %96 = arith.addf %94, %95 : vector<8x128xf32>
    %97 = arith.addf %14, %96 : vector<8x128xf32>
    %c4_43 = arith.constant 4 : index
    %c0_44 = arith.constant 0 : index
    %c0_45 = arith.constant 0 : index
    %98 = vector.load %arg1[%c4_43, %c0_44, %c0_45] : memref<8x128x128xbf16, #tpu.memory_space<vmem>>, vector<1x128x128xbf16>
    %99 = vector.shape_cast %98 : vector<1x128x128xbf16> to vector<128x128xbf16>
    %c8 = arith.constant 8 : index
    %c0_46 = arith.constant 0 : index
    %100 = vector.load %arg2[%c8, %c0_46] : memref<16x128xf32, #tpu.memory_space<vmem>>, vector<1x128xf32>
    %101 = arith.truncf %97 : vector<8x128xf32> to vector<8x128xbf16>
    %cst_47 = arith.constant dense<0.000000e+00> : vector<8x128xf32>
    %102 = tpu.matmul %101, %99, %cst_47 {dimension_numbers = #tpu.dot_dimension_numbers<[1], [0], [0], [1], [0, 0, 1, 1], [], []>} : vector<8x128xbf16>, vector<128x128xbf16>, vector<8x128xf32> -> vector<8x128xf32>
    %103 = vector.broadcast %100 : vector<1x128xf32> to vector<8x128xf32>
    %104 = arith.addf %102, %103 : vector<8x128xf32>
    %c9 = arith.constant 9 : index
    %c0_48 = arith.constant 0 : index
    %105 = vector.load %arg2[%c9, %c0_48] : memref<16x128xf32, #tpu.memory_space<vmem>>, vector<1x128xf32>
    %c10 = arith.constant 10 : index
    %c0_49 = arith.constant 0 : index
    %106 = vector.load %arg2[%c10, %c0_49] : memref<16x128xf32, #tpu.memory_space<vmem>>, vector<1x128xf32>
    %c11 = arith.constant 11 : index
    %c0_50 = arith.constant 0 : index
    %107 = vector.load %arg2[%c11, %c0_50] : memref<16x128xf32, #tpu.memory_space<vmem>>, vector<1x128xf32>
    %c12 = arith.constant 12 : index
    %c0_51 = arith.constant 0 : index
    %108 = vector.load %arg2[%c12, %c0_51] : memref<16x128xf32, #tpu.memory_space<vmem>>, vector<1x128xf32>
    %c13 = arith.constant 13 : index
    %c0_52 = arith.constant 0 : index
    %109 = vector.load %arg2[%c13, %c0_52] : memref<16x128xf32, #tpu.memory_space<vmem>>, vector<1x128xf32>
    %c14 = arith.constant 14 : index
    %c0_53 = arith.constant 0 : index
    %110 = vector.load %arg2[%c14, %c0_53] : memref<16x128xf32, #tpu.memory_space<vmem>>, vector<1x128xf32>
    %cst_54 = arith.constant dense<0.000000e+00> : vector<128xf32>
    %111 = vector.multi_reduction <add>, %104, %cst_54 [0] : vector<8x128xf32> to vector<128xf32>
    %112 = vector.shape_cast %111 : vector<128xf32> to vector<1x128xf32>
    %cst_55 = arith.constant 8.000000e+00 : f32
    %113 = vector.broadcast %cst_55 : f32 to vector<1x128xf32>
    %114 = arith.divf %112, %113 : vector<1x128xf32>
    %115 = arith.mulf %104, %104 : vector<8x128xf32>
    %cst_56 = arith.constant dense<0.000000e+00> : vector<128xf32>
    %116 = vector.multi_reduction <add>, %115, %cst_56 [0] : vector<8x128xf32> to vector<128xf32>
    %117 = vector.shape_cast %116 : vector<128xf32> to vector<1x128xf32>
    %cst_57 = arith.constant 8.000000e+00 : f32
    %118 = vector.broadcast %cst_57 : f32 to vector<1x128xf32>
    %119 = arith.divf %117, %118 : vector<1x128xf32>
    %120 = arith.mulf %114, %114 : vector<1x128xf32>
    %121 = arith.subf %119, %120 : vector<1x128xf32>
    %cst_58 = arith.constant 0.000000e+00 : f32
    %122 = vector.broadcast %cst_58 : f32 to vector<1x128xf32>
    %123 = arith.maximumf %121, %122 : vector<1x128xf32>
    %124 = vector.broadcast %114 : vector<1x128xf32> to vector<8x128xf32>
    %125 = arith.subf %104, %124 : vector<8x128xf32>
    %cst_59 = arith.constant 9.99999974E-6 : f32
    %126 = vector.broadcast %cst_59 : f32 to vector<1x128xf32>
    %127 = arith.addf %123, %126 : vector<1x128xf32>
    %128 = math.rsqrt %127 : vector<1x128xf32>
    %129 = vector.broadcast %128 : vector<1x128xf32> to vector<8x128xf32>
    %130 = arith.mulf %125, %129 : vector<8x128xf32>
    %131 = vector.broadcast %105 : vector<1x128xf32> to vector<8x128xf32>
    %132 = arith.mulf %130, %131 : vector<8x128xf32>
    %133 = vector.broadcast %106 : vector<1x128xf32> to vector<8x128xf32>
    %134 = arith.addf %132, %133 : vector<8x128xf32>
    %cst_60 = arith.constant 0.000000e+00 : f32
    %135 = vector.broadcast %cst_60 : f32 to vector<8x128xf32>
    %136 = arith.cmpf ogt, %134, %135 : vector<8x128xf32>
    %cst_61 = arith.constant 0.000000e+00 : f32
    %137 = vector.broadcast %cst_61 : f32 to vector<8x128xf32>
    %138 = arith.minimumf %134, %137 : vector<8x128xf32>
    %139 = math.exp %138 : vector<8x128xf32>
    %cst_62 = arith.constant 1.000000e+00 : f32
    %140 = vector.broadcast %cst_62 : f32 to vector<8x128xf32>
    %141 = arith.subf %139, %140 : vector<8x128xf32>
    %142 = arith.select %136, %134, %141 : vector<8x128xi1>, vector<8x128xf32>
    %c5_63 = arith.constant 5 : index
    %c0_64 = arith.constant 0 : index
    %c0_65 = arith.constant 0 : index
    %143 = vector.load %arg1[%c5_63, %c0_64, %c0_65] : memref<8x128x128xbf16, #tpu.memory_space<vmem>>, vector<1x128x128xbf16>
    %144 = vector.shape_cast %143 : vector<1x128x128xbf16> to vector<128x128xbf16>
    %145 = arith.truncf %142 : vector<8x128xf32> to vector<8x128xbf16>
    %cst_66 = arith.constant dense<0.000000e+00> : vector<8x128xf32>
    %146 = tpu.matmul %145, %144, %cst_66 {dimension_numbers = #tpu.dot_dimension_numbers<[1], [0], [0], [1], [0, 0, 1, 1], [], []>} : vector<8x128xbf16>, vector<128x128xbf16>, vector<8x128xf32> -> vector<8x128xf32>
    %147 = vector.broadcast %107 : vector<1x128xf32> to vector<8x128xf32>
    %148 = arith.addf %146, %147 : vector<8x128xf32>
    %cst_67 = arith.constant dense<0.000000e+00> : vector<128xf32>
    %149 = vector.multi_reduction <add>, %148, %cst_67 [0] : vector<8x128xf32> to vector<128xf32>
    %150 = vector.shape_cast %149 : vector<128xf32> to vector<1x128xf32>
    %cst_68 = arith.constant 8.000000e+00 : f32
    %151 = vector.broadcast %cst_68 : f32 to vector<1x128xf32>
    %152 = arith.divf %150, %151 : vector<1x128xf32>
    %153 = arith.mulf %148, %148 : vector<8x128xf32>
    %cst_69 = arith.constant dense<0.000000e+00> : vector<128xf32>
    %154 = vector.multi_reduction <add>, %153, %cst_69 [0] : vector<8x128xf32> to vector<128xf32>
    %155 = vector.shape_cast %154 : vector<128xf32> to vector<1x128xf32>
    %cst_70 = arith.constant 8.000000e+00 : f32
    %156 = vector.broadcast %cst_70 : f32 to vector<1x128xf32>
    %157 = arith.divf %155, %156 : vector<1x128xf32>
    %158 = arith.mulf %152, %152 : vector<1x128xf32>
    %159 = arith.subf %157, %158 : vector<1x128xf32>
    %cst_71 = arith.constant 0.000000e+00 : f32
    %160 = vector.broadcast %cst_71 : f32 to vector<1x128xf32>
    %161 = arith.maximumf %159, %160 : vector<1x128xf32>
    %162 = vector.broadcast %152 : vector<1x128xf32> to vector<8x128xf32>
    %163 = arith.subf %148, %162 : vector<8x128xf32>
    %cst_72 = arith.constant 9.99999974E-6 : f32
    %164 = vector.broadcast %cst_72 : f32 to vector<1x128xf32>
    %165 = arith.addf %161, %164 : vector<1x128xf32>
    %166 = math.rsqrt %165 : vector<1x128xf32>
    %167 = vector.broadcast %166 : vector<1x128xf32> to vector<8x128xf32>
    %168 = arith.mulf %163, %167 : vector<8x128xf32>
    %169 = vector.broadcast %108 : vector<1x128xf32> to vector<8x128xf32>
    %170 = arith.mulf %168, %169 : vector<8x128xf32>
    %171 = vector.broadcast %109 : vector<1x128xf32> to vector<8x128xf32>
    %172 = arith.addf %170, %171 : vector<8x128xf32>
    %cst_73 = arith.constant 0.000000e+00 : f32
    %173 = vector.broadcast %cst_73 : f32 to vector<8x128xf32>
    %174 = arith.cmpf ogt, %172, %173 : vector<8x128xf32>
    %cst_74 = arith.constant 0.000000e+00 : f32
    %175 = vector.broadcast %cst_74 : f32 to vector<8x128xf32>
    %176 = arith.minimumf %172, %175 : vector<8x128xf32>
    %177 = math.exp %176 : vector<8x128xf32>
    %cst_75 = arith.constant 1.000000e+00 : f32
    %178 = vector.broadcast %cst_75 : f32 to vector<8x128xf32>
    %179 = arith.subf %177, %178 : vector<8x128xf32>
    %180 = arith.select %174, %172, %179 : vector<8x128xi1>, vector<8x128xf32>
    %c6_76 = arith.constant 6 : index
    %c0_77 = arith.constant 0 : index
    %c0_78 = arith.constant 0 : index
    %181 = vector.load %arg1[%c6_76, %c0_77, %c0_78] : memref<8x128x128xbf16, #tpu.memory_space<vmem>>, vector<1x128x128xbf16>
    %182 = vector.shape_cast %181 : vector<1x128x128xbf16> to vector<128x128xbf16>
    %183 = arith.truncf %180 : vector<8x128xf32> to vector<8x128xbf16>
    %cst_79 = arith.constant dense<0.000000e+00> : vector<8x128xf32>
    %184 = tpu.matmul %183, %182, %cst_79 {dimension_numbers = #tpu.dot_dimension_numbers<[1], [0], [0], [1], [0, 0, 1, 1], [], []>} : vector<8x128xbf16>, vector<128x128xbf16>, vector<8x128xf32> -> vector<8x128xf32>
    %185 = vector.broadcast %110 : vector<1x128xf32> to vector<8x128xf32>
    %186 = arith.addf %184, %185 : vector<8x128xf32>
    %187 = arith.addf %104, %186 : vector<8x128xf32>
    %c7_80 = arith.constant 7 : index
    %c0_81 = arith.constant 0 : index
    %c0_82 = arith.constant 0 : index
    %188 = vector.load %arg1[%c7_80, %c0_81, %c0_82] : memref<8x128x128xbf16, #tpu.memory_space<vmem>>, vector<1x128x128xbf16>
    %189 = vector.shape_cast %188 : vector<1x128x128xbf16> to vector<128x128xbf16>
    %c15 = arith.constant 15 : index
    %c0_83 = arith.constant 0 : index
    %190 = vector.load %arg2[%c15, %c0_83] : memref<16x128xf32, #tpu.memory_space<vmem>>, vector<1x128xf32>
    %191 = arith.truncf %187 : vector<8x128xf32> to vector<8x128xbf16>
    %cst_84 = arith.constant dense<0.000000e+00> : vector<8x128xf32>
    %192 = tpu.matmul %191, %189, %cst_84 {dimension_numbers = #tpu.dot_dimension_numbers<[1], [0], [0], [1], [0, 0, 1, 1], [], []>} : vector<8x128xbf16>, vector<128x128xbf16>, vector<8x128xf32> -> vector<8x128xf32>
    %193 = vector.broadcast %190 : vector<1x128xf32> to vector<8x128xf32>
    %194 = arith.addf %192, %193 : vector<8x128xf32>
    %c0_85 = arith.constant 0 : index
    %c0_86 = arith.constant 0 : index
    %195 = vector.load %arg3[%c0_85, %c0_86] : memref<8x128xf32, #tpu.memory_space<vmem>>, vector<8x128xf32>
    tpu.vector_store %arg3[%c0_85, %c0_86], %194 {strides = array<i32>} : memref<8x128xf32, #tpu.memory_space<vmem>>, vector<8x128xf32>,
    return
  }
}

</mosaic_0001>

<bundles_post_ra>
// kernel: two_stage_embedding_forward.1
= control target key start
LH: loop header
LB: loop body
LE: loop exit
PB: predicated region body
PF: predicated region fallthrough
CT: control target
= control target key end

     0   :  { %8 = vsyncpa [#allocation3], 0  ;;  %s1722_s0 = inlined_call_operand.vmem [shape: f32[8,128], index: 0, kind: input, shape index: {}]   ;;  %s1723_s1 = inlined_call_operand.hbm [shape: bf16[8,128,128], index: 1, kind: input, shape index: {}]   ;;  %s1724_s2 = inlined_call_operand.vmem [shape: f32[16,128], index: 2, kind: input, shape index: {}]   ;;  %s1725_s3 = inlined_call_operand.hbm [shape: f32[8,128], index: 3, kind: output, shape index: {}]  }
   0x1   :  { %9 = vsyncpa [#allocation4], 0  ;;  %s1543_s12 = smov [#allocation2]  }
   0x2   :  { %s17_s13 = sshll.u32 %s1543_s12, 4  ;;  %s18_s13 = int_to_ptr.vmem [resolvable:$true] %s17_s13 }
   0x3   :  { %s1507_s14 = scalar_lea.vmem %s18_s13, 8192  ;;  %p1512_p1 = scmp.lt.s32.totalorder %s18_s13, %s18_s13 }
   0x4   :  { %p1508_p0 = scmp.ne.s32.totalorder %s18_s13, %s1507_s14  ;;  %p1513_p2 = scmp.lt.s32.totalorder %s1507_s14, %s1507_s14 }
   0x6   :  { %p1514_p3 = por %p1513_p2, %p1512_p1 }
   0x8   :  { %p1515_p4 = pnand %p1514_p3, %p1508_p0 }
   0xa   :  { %1518 = shalt.err (!%p1515_p4)
}
   0xb   :  { %s1544_s15 = smov 64   ;;  %s1545_s16 = smov 4  }
   0xc   :  { %23 = dma.hbm_to_vmem [thread:$0]  %s1723_s1, 8192, %s18_s13, [#allocation3], %s1544_s15, %s1544_s15, %s1545_s16  }
   0xd   :  { %1539 = dma.done.wait [#allocation3], 8192  }
   0xe   :  { %1540 = vsyncadd [#allocation3], 4294959104  ;;  %v1546_v0 = vmov 0.0   ;;  %vm1547_vm0 = vmmov 0   ;;  %v1419_v1 = vld [vmem:[#allocation2 + $0x38] sm:$0xff]   ;;  %v1420_v2 = vld [vmem:[#allocation2 + $0x30] sm:$0xff]  }
   0xf   :  { %1253 = vmatprep.subr.bf16.mxu0 %v1546_v0  ;;  %1269 = vmatprep.mubr.msk.bf16.mxu0 %vm1547_vm0, %v1546_v0  ;;  %v1421_v3 = vld [vmem:[#allocation2 + $0x28] sm:$0xff]   ;;  %v1427_v4 = vld [vmem:[#allocation2 + $0x78] sm:$0xff]   ;;  %v1422_v5 = vld [vmem:[#allocation2 + $0x20] sm:$0xff]   ;;  %s1548_s22 = smov [#allocation5]  }
  0x10   :  { %1273 = vmatprep.subr.bf16.mxu1 %v1546_v0  ;;  %1289 = vmatprep.mubr.msk.bf16.mxu1 %vm1547_vm0, %v1546_v0  ;;  %v1428_v6 = vld [vmem:[#allocation2 + $0x70] sm:$0xff]   ;;  %v1423_v7 = vld [vmem:[#allocation2 + $0x18] sm:$0xff]   ;;  %v1429_v8 = vld [vmem:[#allocation2 + $0x68] sm:$0xff]   ;;  %s1088_s23 = sshll.u32 %s1548_s22, 4  ;;  %s1089_s23 = int_to_ptr.vmem [resolvable:$true] %s1088_s23 }
  0x11   :  { %1254 = vmatpush3.bf16.msra.mxu0 %v1419_v1  ;;  %1274 = vmatpush3.bf16.msra.mxu1 %v1427_v4  ;;  %v1424_v9 = vld [vmem:[#allocation2 + $0x10] sm:$0xff]   ;;  %v1430_v10 = vld [vmem:[#allocation2 + $0x60] sm:$0xff]   ;;  %v1425_v11 = vld [vmem:[#allocation2 + $0x8] sm:$0xff]   ;;  %s1519_s24 = scalar_lea.vmem %s1089_s23, 128  ;;  %p1524_p6 = scmp.lt.s32.totalorder %s1089_s23, %s1089_s23 }
  0x12   :  { %1255 = vmatprep.subr.bf16.mxu0 %v1546_v0  ;;  %1275 = vmatprep.subr.bf16.mxu1 %v1546_v0  ;;  %v1431_v12 = vld [vmem:[#allocation2 + $0x58] sm:$0xff]   ;;  %v1426_v13 = vld [vmem:[#allocation2] sm:$0xff]   ;;  %v1432_v15 = vld [vmem:[#allocation2 + $0x50] sm:$0xff]   ;;  %p1520_p5 = scmp.ne.s32.totalorder %s1089_s23, %s1519_s24  ;;  %p1525_p7 = scmp.lt.s32.totalorder %s1519_s24, %s1519_s24 }
  0x13   :  { %v30_v14 = vld [vmem:[%s1722_s0] sm:$0xff]  ;;  %v1433_v17 = vld [vmem:[#allocation2 + $0x48] sm:$0xff]   ;;  %v1435_v26 = vld [vmem:[#allocation2 + $0xb8] sm:$0xff]  }
  0x14   :  { %v48_v16 = vpack.c.bf16 %v30_v14, %v30_v14  ;;  %v1434_v18 = vld [vmem:[#allocation2 + $0x40] sm:$0xff]   ;;  %v1436_v27 = vld [vmem:[#allocation2 + $0xb0] sm:$0xff]   ;;  %v1437_v28 = vld [vmem:[#allocation2 + $0xa8] sm:$0xff]   ;;  %p1526_p8 = por %p1525_p7, %p1524_p6 }
  0x15   :  { %1256 = vmatpush3.bf16.msra.mxu0 %v1420_v2  ;;  %1276 = vmatpush3.bf16.msra.mxu1 %v1428_v6  ;;  %v1097_v19 = vld [vmem:[%s1724_s2] ss:$0 sm:$0xff]  ;;  %v1439_v30 = vld [vmem:[#allocation2 + $0x98] sm:$0xff]   ;;  %v1440_v31 = vld [vmem:[#allocation2 + $0x90] sm:$0xff]  }
  0x16   :  { %1257 = vmatprep.subr.bf16.mxu0 %v1546_v0  ;;  %1277 = vmatprep.subr.bf16.mxu1 %v1546_v0  ;;  %v1438_v29 = vld [vmem:[#allocation2 + $0xa0] sm:$0xff]   ;;  %v1441_v32 = vld [vmem:[#allocation2 + $0x88] sm:$0xff]   ;;  %v1448_v14 = vld [vmem:[#allocation2 + $0xd0] sm:$0xff]   ;;  %p1527_p9 = pnand %p1526_p8, %p1520_p5 }
  0x17   :  { %v1442_v33 = vld [vmem:[#allocation2 + $0x80] sm:$0xff]  }
  0x18   :  { %v1106_v34 = vld [vmem:[%s1724_s2 + $0x1] ss:$0 sm:$0xff]  ;;  %v1115_v61 = vld [vmem:[%s1724_s2 + $0x2] ss:$0 sm:$0xff]  ;;  %v1116_v63 = vld [vmem:[%s1724_s2 + $0x3] ss:$0 sm:$0xff] }
  0x19   :  { %1258 = vmatpush3.bf16.msra.mxu0 %v1421_v3  ;;  %1278 = vmatpush3.bf16.msra.mxu1 %v1429_v8 }
  0x1a   :  { %1259 = vmatprep.subr.bf16.mxu0 %v1546_v0  ;;  %1279 = vmatprep.subr.bf16.mxu1 %v1546_v0 }
  0x1d   :  { %1260 = vmatpush3.bf16.msra.mxu0 %v1422_v5  ;;  %1280 = vmatpush3.bf16.msra.mxu1 %v1430_v10  ;;  %v1444_v10 = vld [vmem:[#allocation2 + $0xf0] sm:$0xff]  }
  0x1e   :  { %1261 = vmatprep.subr.bf16.mxu0 %v1546_v0  ;;  %1281 = vmatprep.subr.bf16.mxu1 %v1546_v0 }
  0x21   :  { %1262 = vmatpush3.bf16.msra.mxu0 %v1423_v7  ;;  %1282 = vmatpush3.bf16.msra.mxu1 %v1431_v12  ;;  %v1446_v12 = vld [vmem:[#allocation2 + $0xe0] sm:$0xff]  }
  0x22   :  { %1263 = vmatprep.subr.bf16.mxu0 %v1546_v0  ;;  %1283 = vmatprep.subr.bf16.mxu1 %v1546_v0 }
  0x25   :  { %1264 = vmatpush3.bf16.msra.mxu0 %v1424_v9  ;;  %1284 = vmatpush3.bf16.msra.mxu1 %v1432_v15  ;;  %v1443_v9 = vld [vmem:[#allocation2 + $0xf8] sm:$0xff]   ;;  %v1449_v15 = vld [vmem:[#allocation2 + $0xc8] sm:$0xff]  }
  0x26   :  { %1265 = vmatprep.subr.bf16.mxu0 %v1546_v0  ;;  %1285 = vmatprep.subr.bf16.mxu1 %v1546_v0 }
  0x29   :  { %1266 = vmatpush3.bf16.msra.mxu0 %v1425_v11  ;;  %1286 = vmatpush3.bf16.msra.mxu1 %v1433_v17  ;;  %v1445_v11 = vld [vmem:[#allocation2 + $0xe8] sm:$0xff]   ;;  %v1451_v17 = vld [vmem:[#allocation2 + $0x138] sm:$0xff]  }
  0x2a   :  { %1267 = vmatprep.subr.bf16.mxu0 %v1546_v0  ;;  %1287 = vmatprep.subr.bf16.mxu1 %v1546_v0 }
  0x2d   :  { %1268 = vmatpush3.bf16.msra.mxu0 %v1426_v13  ;;  %1288 = vmatpush3.bf16.msra.mxu1 %v1434_v18  ;;  %v1447_v13 = vld [vmem:[#allocation2 + $0xd8] sm:$0xff]   ;;  %v1452_v18 = vld [vmem:[#allocation2 + $0x130] sm:$0xff]  }
  0x2e   :  { %1293 = vmatprep.subr.bf16.mxu0 %v1546_v0  ;;  %1313 = vmatprep.subr.bf16.mxu1 %v1546_v0 }
  0x30   :  { %1270 = vmatmul.mubr.bf16.vlgmr.msra.gmra.mxu0 %v48_v16  ;;  %v1450_v16 = vld [vmem:[#allocation2 + $0xc0] sm:$0xff]  }
  0x31   :  { %1309 = vmatprep.mubr.msk.bf16.mxu0 %vm1547_vm0, %v1546_v0  ;;  %1294 = vmatpush3.bf16.msra.mxu0 %v1435_v26 }
  0x32   :  { %1295 = vmatprep.subr.bf16.mxu0 %v1546_v0 }
  0x35   :  { %1296 = vmatpush3.bf16.msra.mxu0 %v1436_v27 }
  0x36   :  { %1297 = vmatprep.subr.bf16.mxu0 %v1546_v0 }
  0x39   :  { %1298 = vmatpush3.bf16.msra.mxu0 %v1437_v28 }
  0x3a   :  { %1299 = vmatprep.subr.bf16.mxu0 %v1546_v0 }
  0x3d   :  { %1300 = vmatpush3.bf16.msra.mxu0 %v1438_v29 }
  0x3e   :  { %1301 = vmatprep.subr.bf16.mxu0 %v1546_v0 }
  0x41   :  { %1302 = vmatpush3.bf16.msra.mxu0 %v1439_v30 }
  0x42   :  { %1303 = vmatprep.subr.bf16.mxu0 %v1546_v0 }
  0x45   :  { %1304 = vmatpush3.bf16.msra.mxu0 %v1440_v31 }
  0x46   :  { %1305 = vmatprep.subr.bf16.mxu0 %v1546_v0 }
  0x49   :  { %1306 = vmatpush3.bf16.msra.mxu0 %v1441_v32 }
  0x4a   :  { %1307 = vmatprep.subr.bf16.mxu0 %v1546_v0 }
  0x4d   :  { %1308 = vmatpush3.bf16.msra.mxu0 %v1442_v33 }
  0x4e   :  { %1333 = vmatprep.subr.bf16.mxu0 %v1546_v0 }
  0xf0   :  { %v135_v20 = vpop.f32.mrf.mxu0 }
  0xf1   :  { %v136_v21 = vadd.f32 %v1097_v19, %v135_v20  ;;  %v1453_v19 = vld [vmem:[#allocation2 + $0x128] sm:$0xff]   ;;  %v1454_v20 = vld [vmem:[#allocation2 + $0x120] sm:$0xff]  }
  0xf2   :  { %v1271_v22 = vpop.f32.mrf.mxu0 }
  0xf3   :  { %v159_v23 = vpack.c.bf16 %v136_v21, %v136_v21  ;;  %v1455_v21 = vld [vmem:[#allocation2 + $0x118] sm:$0xff]   ;;  %v1456_v22 = vld [vmem:[#allocation2 + $0x110] sm:$0xff]  }
  0xf4   :  { %v138_v24 = vpop.f32.mrf.mxu0 }
  0xf5   :  { %1290 = vmatmul.mubr.bf16.vlgmr.msra.gmra.mxu1 %v159_v23  ;;  %v1118_v23 = vld [vmem:[%s1724_s2 + $0x4] ss:$0 sm:$0xff] }
  0xf6   :  { %v1272_v25 = vpop.f32.mrf.mxu0  ;;  %1329 = vmatprep.mubr.msk.bf16.mxu1 %vm1547_vm0, %v1546_v0  ;;  %1314 = vmatpush3.bf16.msra.mxu1 %v1443_v9  ;;  %v1459_v9 = vld [vmem:[#allocation2 + $0x178] sm:$0xff]  }
  0xf7   :  { %1315 = vmatprep.subr.bf16.mxu1 %v1546_v0 }
  0xfa   :  { %1316 = vmatpush3.bf16.msra.mxu1 %v1444_v10  ;;  %v1460_v10 = vld [vmem:[#allocation2 + $0x170] sm:$0xff]  }
  0xfb   :  { %1317 = vmatprep.subr.bf16.mxu1 %v1546_v0 }
  0xfe   :  { %1318 = vmatpush3.bf16.msra.mxu1 %v1445_v11  ;;  %v1461_v11 = vld [vmem:[#allocation2 + $0x168] sm:$0xff]  }
  0xff   :  { %1319 = vmatprep.subr.bf16.mxu1 %v1546_v0 }
 0x102   :  { %1320 = vmatpush3.bf16.msra.mxu1 %v1446_v12  ;;  %v1462_v12 = vld [vmem:[#allocation2 + $0x160] sm:$0xff]  }
 0x103   :  { %1321 = vmatprep.subr.bf16.mxu1 %v1546_v0 }
 0x106   :  { %1322 = vmatpush3.bf16.msra.mxu1 %v1447_v13  ;;  %v1464_v13 = vld [vmem:[#allocation2 + $0x150] sm:$0xff]  }
 0x107   :  { %1323 = vmatprep.subr.bf16.mxu1 %v1546_v0 }
 0x10a   :  { %1324 = vmatpush3.bf16.msra.mxu1 %v1448_v14  ;;  %v1465_v14 = vld [vmem:[#allocation2 + $0x148] sm:$0xff]  }
 0x10b   :  { %1325 = vmatprep.subr.bf16.mxu1 %v1546_v0 }
 0x10e   :  { %1326 = vmatpush3.bf16.msra.mxu1 %v1449_v15  ;;  %v1466_v15 = vld [vmem:[#allocation2 + $0x140] sm:$0xff]  }
 0x10f   :  { %1327 = vmatprep.subr.bf16.mxu1 %v1546_v0 }
 0x112   :  { %1328 = vmatpush3.bf16.msra.mxu1 %v1450_v16  ;;  %v1139_v16 = vld [vmem:[%s1724_s2 + $0x8] ss:$0 sm:$0xff] }
 0x113   :  { %1353 = vmatprep.subr.bf16.mxu1 %v1546_v0 }
 0x1b5   :  { %v246_v35 = vpop.f32.mrf.mxu1 }
 0x1b6   :  { %v1615_v36 = vadd.f32 %v1106_v34, %v246_v35 }
 0x1b7   :  { %v1291_v37 = vpop.f32.mrf.mxu1 }
 0x1b8   :  { %v258_v38 = vrot.slane %v1615_v36, 4  ;;  %v266_v39 = vmul.f32 %v1615_v36, %v1615_v36 }
 0x1b9   :  { %v249_v40 = vpop.f32.mrf.mxu1 }
 0x1ba   :  { %v259_v41 = vadd.f32 %v258_v38, %v1615_v36  ;;  %v267_v42 = vrot.slane %v266_v39, 4 }
 0x1bb   :  { %v1292_v43 = vpop.f32.mrf.mxu1 }
 0x1bc   :  { %v260_v44 = vrot.slane %v259_v41, 2  ;;  %v268_v45 = vadd.f32 %v267_v42, %v266_v39 }
 0x1be   :  { %v261_v46 = vadd.f32 %v260_v44, %v259_v41  ;;  %v269_v47 = vrot.slane %v268_v45, 2 }
 0x1c0   :  { %v262_v48 = vrot.slane %v261_v46, 1  ;;  %v270_v49 = vadd.f32 %v269_v47, %v268_v45 }
 0x1c2   :  { %v263_v50 = vadd.f32 %v262_v48, %v261_v46  ;;  %v271_v51 = vrot.slane %v270_v49, 1 }
 0x1c4   :  { %v265_v52 = vmul.f32 0.125, %v263_v50  ;;  %v272_v53 = vadd.f32 %v271_v51, %v270_v49  ;;  %v1127_v51 = vld [vmem:[%s1724_s2 + $0x5] ss:$0 sm:$0xff] }
 0x1c6   :  { %v273_v54 = vmul.f32 0.125, %v272_v53  ;;  %v274_v55 = vmul.f32 %v265_v52, %v265_v52  ;;  %v277_v59 = vsub.f32 %v1615_v36, %v265_v52  ;;  %v1128_v53 = vld [vmem:[%s1724_s2 + $0x6] ss:$0 sm:$0xff] }
 0x1c8   :  { %v275_v56 = vsub.f32 %v273_v54, %v274_v55 }
 0x1ca   :  { %v276_v57 = vmax.f32 %v275_v56, 0.0 }
 0x1cc   :  { %v278_v58 = vadd.f32 1e-05, %v276_v57 }
 0x1ce   :  { %1483 = vrsqrt.f32 %v278_v58 }
 0x1db   :  { %v1484_v60 = vpop.eup %1483 }
 0x1dc   :  { %v280_v62 = vmul.f32 %v1484_v60, %v277_v59 }
 0x1de   :  { %v285_v1 = vmul.f32 %v1115_v61, %v280_v62  ;;  %v1457_v62 = vld [vmem:[#allocation2 + $0x108] sm:$0xff]  }
 0x1e0   :  { %v290_v2 = vadd.f32 %v1116_v63, %v285_v1  ;;  %v1458_v63 = vld [vmem:[#allocation2 + $0x100] sm:$0xff]  }
 0x1e1   :  { %v1130_v1 = vld [vmem:[%s1724_s2 + $0x7] ss:$0 sm:$0xff] }
 0x1e2   :  { %v292_v3 = vmin.f32 %v290_v2, 0.0  ;;  %vm291_vm1 = vcmp.gt.f32.partialorder %v290_v2, 0.0 }
 0x1e4   :  { %v293_v4 = vmul.f32 1.442695, %v292_v3 }
 0x1e6   :  { %1485 = vpow2.f32 %v293_v4 }
 0x1f3   :  { %v1486_v5 = vpop.eup %1485 }
 0x1f4   :  { %v1117_v6 = vadd.f32 -1.0, %v1486_v5 }
 0x1f6   :  { %v296_v7 = vsel %vm291_vm1, %v290_v2, %v1117_v6 }
 0x1f7   :  { %v314_v8 = vpack.c.bf16 %v296_v7, %v296_v7 }
 0x1f9   :  { %1310 = vmatmul.mubr.bf16.vlgmr.msra.gmra.mxu0 %v314_v8 }
 0x1fa   :  { %1349 = vmatprep.mubr.msk.bf16.mxu0 %vm1547_vm0, %v1546_v0  ;;  %1334 = vmatpush3.bf16.msra.mxu0 %v1451_v17 }
 0x1fb   :  { %1335 = vmatprep.subr.bf16.mxu0 %v1546_v0 }
 0x1fe   :  { %1336 = vmatpush3.bf16.msra.mxu0 %v1452_v18 }
 0x1ff   :  { %1337 = vmatprep.subr.bf16.mxu0 %v1546_v0 }
 0x202   :  { %1338 = vmatpush3.bf16.msra.mxu0 %v1453_v19 }
 0x203   :  { %1339 = vmatprep.subr.bf16.mxu0 %v1546_v0 }
 0x206   :  { %1340 = vmatpush3.bf16.msra.mxu0 %v1454_v20 }
 0x207   :  { %1341 = vmatprep.subr.bf16.mxu0 %v1546_v0 }
 0x20a   :  { %1342 = vmatpush3.bf16.msra.mxu0 %v1455_v21 }
 0x20b   :  { %1343 = vmatprep.subr.bf16.mxu0 %v1546_v0 }
 0x20e   :  { %1344 = vmatpush3.bf16.msra.mxu0 %v1456_v22 }
 0x20f   :  { %1345 = vmatprep.subr.bf16.mxu0 %v1546_v0 }
 0x212   :  { %1346 = vmatpush3.bf16.msra.mxu0 %v1457_v62  ;;  %v1474_v62 = vld [vmem:[#allocation2 + $0x180] sm:$0xff]  }
 0x213   :  { %1347 = vmatprep.subr.bf16.mxu0 %v1546_v0 }
 0x216   :  { %1348 = vmatpush3.bf16.msra.mxu0 %v1458_v63  ;;  %v1475_v63 = vld [vmem:[#allocation2 + $0x1f8] sm:$0xff]  }
 0x217   :  { %1373 = vmatprep.subr.bf16.mxu0 %v1546_v0 }
 0x2b9   :  { %v401_v24 = vpop.f32.mrf.mxu0 }
 0x2ba   :  { %v402_v25 = vadd.f32 %v1118_v23, %v401_v24 }
 0x2bb   :  { %v1311_v26 = vpop.f32.mrf.mxu0 }
 0x2bc   :  { %v407_v27 = vrot.slane %v402_v25, 4  ;;  %v414_v28 = vmul.f32 %v402_v25, %v402_v25 }
 0x2bd   :  { %v404_v29 = vpop.f32.mrf.mxu0 }
 0x2be   :  { %v408_v30 = vadd.f32 %v407_v27, %v402_v25  ;;  %v415_v31 = vrot.slane %v414_v28, 4 }
 0x2bf   :  { %v1312_v32 = vpop.f32.mrf.mxu0 }
 0x2c0   :  { %v409_v33 = vrot.slane %v408_v30, 2  ;;  %v416_v34 = vadd.f32 %v415_v31, %v414_v28 }
 0x2c2   :  { %v410_v35 = vadd.f32 %v409_v33, %v408_v30  ;;  %v417_v37 = vrot.slane %v416_v34, 2 }
 0x2c4   :  { %v411_v38 = vrot.slane %v410_v35, 1  ;;  %v418_v39 = vadd.f32 %v417_v37, %v416_v34 }
 0x2c6   :  { %v412_v40 = vadd.f32 %v411_v38, %v410_v35  ;;  %v419_v41 = vrot.slane %v418_v39, 1 }
 0x2c8   :  { %v413_v42 = vmul.f32 0.125, %v412_v40  ;;  %v420_v43 = vadd.f32 %v419_v41, %v418_v39 }
 0x2ca   :  { %v421_v44 = vmul.f32 0.125, %v420_v43  ;;  %v422_v45 = vmul.f32 %v413_v42, %v413_v42  ;;  %v425_v49 = vsub.f32 %v402_v25, %v413_v42 }
 0x2cc   :  { %v423_v46 = vsub.f32 %v421_v44, %v422_v45  ;;  %v1148_v44 = vld [vmem:[%s1724_s2 + $0x9] ss:$0 sm:$0xff] }
 0x2ce   :  { %v424_v47 = vmax.f32 %v423_v46, 0.0  ;;  %v1149_v46 = vld [vmem:[%s1724_s2 + $0xa] ss:$0 sm:$0xff] }
 0x2d0   :  { %v426_v48 = vadd.f32 1e-05, %v424_v47 }
 0x2d2   :  { %1487 = vrsqrt.f32 %v426_v48 }
 0x2df   :  { %v1488_v50 = vpop.eup %1487 }
 0x2e0   :  { %v428_v52 = vmul.f32 %v1488_v50, %v425_v49 }
 0x2e2   :  { %v433_v54 = vmul.f32 %v1127_v51, %v428_v52 }
 0x2e4   :  { %v438_v55 = vadd.f32 %v1128_v53, %v433_v54 }
 0x2e6   :  { %v440_v56 = vmin.f32 %v438_v55, 0.0  ;;  %vm439_vm2 = vcmp.gt.f32.partialorder %v438_v55, 0.0 }
 0x2e8   :  { %v441_v57 = vmul.f32 1.442695, %v440_v56  ;;  %v1468_v56 = vld [vmem:[#allocation2 + $0x1b0] sm:$0xff]  }
 0x2ea   :  { %1489 = vpow2.f32 %v441_v57  ;;  %v1469_v57 = vld [vmem:[#allocation2 + $0x1a8] sm:$0xff]  }
 0x2f7   :  { %v1490_v58 = vpop.eup %1489 }
 0x2f8   :  { %v1129_v59 = vadd.f32 -1.0, %v1490_v58  ;;  %v1470_v58 = vld [vmem:[#allocation2 + $0x1a0] sm:$0xff]  }
 0x2fa   :  { %v444_v60 = vsel %vm439_vm2, %v438_v55, %v1129_v59  ;;  %v1467_v55 = vld [vmem:[#allocation2 + $0x1b8] sm:$0xff]  }
 0x2fb   :  { %v462_v61 = vpack.c.bf16 %v444_v60, %v444_v60  ;;  %v1471_v59 = vld [vmem:[#allocation2 + $0x198] sm:$0xff]   ;;  %v1472_v60 = vld [vmem:[#allocation2 + $0x190] sm:$0xff]  }
 0x2fd   :  { %1330 = vmatmul.mubr.bf16.vlgmr.msra.gmra.mxu1 %v462_v61  ;;  %v1473_v61 = vld [vmem:[#allocation2 + $0x188] sm:$0xff]  }
 0x2fe   :  { %1369 = vmatprep.mubr.msk.bf16.mxu1 %vm1547_vm0, %v1546_v0  ;;  %1354 = vmatpush3.bf16.msra.mxu1 %v1459_v9 }
 0x2ff   :  { %1355 = vmatprep.subr.bf16.mxu1 %v1546_v0 }
 0x302   :  { %1356 = vmatpush3.bf16.msra.mxu1 %v1460_v10 }
 0x303   :  { %1357 = vmatprep.subr.bf16.mxu1 %v1546_v0 }
 0x306   :  { %1358 = vmatpush3.bf16.msra.mxu1 %v1461_v11 }
 0x307   :  { %1359 = vmatprep.subr.bf16.mxu1 %v1546_v0 }
 0x30a   :  { %1360 = vmatpush3.bf16.msra.mxu1 %v1462_v12 }
 0x30b   :  { %1361 = vmatprep.subr.bf16.mxu1 %v1546_v0 }
 0x3bd   :  { %v549_v2 = vpop.f32.mrf.mxu1 }
 0x3be   :  { %v550_v3 = vadd.f32 %v1130_v1, %v549_v2  ;;  %v1476_v1 = vld [vmem:[#allocation2 + $0x1f0] sm:$0xff]   ;;  %v1477_v2 = vld [vmem:[#allocation2 + $0x1e8] sm:$0xff]  }
 0x3bf   :  { %v1331_v4 = vpop.f32.mrf.mxu1 }
 0x3c0   :  { %v555_v5 = vadd.f32 %v550_v3, %v1615_v36  ;;  %v1463_v36 = vld [vmem:[#allocation2 + $0x158] sm:$0xff]   ;;  %v1478_v3 = vld [vmem:[#allocation2 + $0x1e0] sm:$0xff]  }
 0x3c1   :  { %v552_v6 = vpop.f32.mrf.mxu1  ;;  %1362 = vmatpush3.bf16.msra.mxu1 %v1463_v36  ;;  %v1479_v4 = vld [vmem:[#allocation2 + $0x1d8] sm:$0xff]  }
 0x3c2   :  { %v574_v7 = vpack.c.bf16 %v555_v5, %v555_v5  ;;  %1363 = vmatprep.subr.bf16.mxu1 %v1546_v0  ;;  %v1480_v5 = vld [vmem:[#allocation2 + $0x1d0] sm:$0xff]   ;;  %v1151_v6 = vld [vmem:[%s1724_s2 + $0xb] ss:$0 sm:$0xff] }
 0x3c3   :  { %v1332_v8 = vpop.f32.mrf.mxu1 }
 0x3c4   :  { %1350 = vmatmul.mubr.bf16.vlgmr.msra.gmra.mxu0 %v574_v7 }
 0x3c5   :  { %1389 = vmatprep.mubr.msk.bf16.mxu0 %vm1547_vm0, %v1546_v0  ;;  %1364 = vmatpush3.bf16.msra.mxu1 %v1464_v13 }
 0x3c6   :  { %1365 = vmatprep.subr.bf16.mxu1 %v1546_v0  ;;  %1374 = vmatpush3.bf16.msra.mxu0 %v1467_v55  ;;  %v1172_v55 = vld [vmem:[%s1724_s2 + $0xf] ss:$0 sm:$0xff] }
 0x3c7   :  { %1375 = vmatprep.subr.bf16.mxu0 %v1546_v0 }
 0x3c9   :  { %1366 = vmatpush3.bf16.msra.mxu1 %v1465_v14 }
 0x3ca   :  { %1367 = vmatprep.subr.bf16.mxu1 %v1546_v0  ;;  %1376 = vmatpush3.bf16.msra.mxu0 %v1468_v56 }
 0x3cb   :  { %1377 = vmatprep.subr.bf16.mxu0 %v1546_v0 }
 0x3cd   :  { %1368 = vmatpush3.bf16.msra.mxu1 %v1466_v15 }
 0x3ce   :  { %1393 = vmatprep.subr.bf16.mxu1 %v1546_v0  ;;  %1378 = vmatpush3.bf16.msra.mxu0 %v1469_v57 }
 0x3cf   :  { %1379 = vmatprep.subr.bf16.mxu0 %v1546_v0 }
 0x3d2   :  { %1380 = vmatpush3.bf16.msra.mxu0 %v1470_v58 }
 0x3d3   :  { %1381 = vmatprep.subr.bf16.mxu0 %v1546_v0 }
 0x3d6   :  { %1382 = vmatpush3.bf16.msra.mxu0 %v1471_v59 }
 0x3d7   :  { %1383 = vmatprep.subr.bf16.mxu0 %v1546_v0 }
 0x3da   :  { %1384 = vmatpush3.bf16.msra.mxu0 %v1472_v60 }
 0x3db   :  { %1385 = vmatprep.subr.bf16.mxu0 %v1546_v0 }
 0x3de   :  { %1386 = vmatpush3.bf16.msra.mxu0 %v1473_v61 }
 0x3df   :  { %1387 = vmatprep.subr.bf16.mxu0 %v1546_v0 }
 0x3e2   :  { %1388 = vmatpush3.bf16.msra.mxu0 %v1474_v62 }
 0x484   :  { %v661_v17 = vpop.f32.mrf.mxu0 }
 0x485   :  { %v1674_v18 = vadd.f32 %v1139_v16, %v661_v17 }
 0x486   :  { %v1351_v19 = vpop.f32.mrf.mxu0 }
 0x487   :  { %v673_v20 = vrot.slane %v1674_v18, 4  ;;  %v680_v21 = vmul.f32 %v1674_v18, %v1674_v18 }
 0x488   :  { %v664_v22 = vpop.f32.mrf.mxu0 }
 0x489   :  { %v674_v23 = vadd.f32 %v673_v20, %v1674_v18  ;;  %v681_v24 = vrot.slane %v680_v21, 4 }
 0x48a   :  { %v1352_v25 = vpop.f32.mrf.mxu0 }
 0x48b   :  { %v675_v26 = vrot.slane %v674_v23, 2  ;;  %v682_v27 = vadd.f32 %v681_v24, %v680_v21 }
 0x48d   :  { %v676_v28 = vadd.f32 %v675_v26, %v674_v23  ;;  %v683_v29 = vrot.slane %v682_v27, 2 }
 0x48f   :  { %v677_v30 = vrot.slane %v676_v28, 1  ;;  %v684_v31 = vadd.f32 %v683_v29, %v682_v27 }
 0x491   :  { %v678_v32 = vadd.f32 %v677_v30, %v676_v28  ;;  %v685_v33 = vrot.slane %v684_v31, 1 }
 0x493   :  { %v679_v34 = vmul.f32 0.125, %v678_v32  ;;  %v686_v35 = vadd.f32 %v685_v33, %v684_v31  ;;  %v1160_v33 = vld [vmem:[%s1724_s2 + $0xc] ss:$0 sm:$0xff] }
 0x495   :  { %v687_v37 = vmul.f32 0.125, %v686_v35  ;;  %v688_v38 = vmul.f32 %v679_v34, %v679_v34  ;;  %v691_v42 = vsub.f32 %v1674_v18, %v679_v34  ;;  %v1161_v35 = vld [vmem:[%s1724_s2 + $0xd] ss:$0 sm:$0xff] }
 0x497   :  { %v689_v39 = vsub.f32 %v687_v37, %v688_v38 }
 0x499   :  { %v690_v40 = vmax.f32 %v689_v39, 0.0 }
 0x49b   :  { %v692_v41 = vadd.f32 1e-05, %v690_v40 }
 0x49d   :  { %1491 = vrsqrt.f32 %v692_v41 }
 0x4aa   :  { %v1492_v43 = vpop.eup %1491 }
 0x4ab   :  { %v694_v45 = vmul.f32 %v1492_v43, %v691_v42 }
 0x4ad   :  { %v699_v47 = vmul.f32 %v1148_v44, %v694_v45  ;;  %v1481_v45 = vld [vmem:[#allocation2 + $0x1c8] sm:$0xff]  }
 0x4af   :  { %v704_v48 = vadd.f32 %v1149_v46, %v699_v47  ;;  %v1482_v46 = vld [vmem:[#allocation2 + $0x1c0] sm:$0xff]   ;;  %v1163_v47 = vld [vmem:[%s1724_s2 + $0xe] ss:$0 sm:$0xff] }
 0x4b1   :  { %v706_v49 = vmin.f32 %v704_v48, 0.0  ;;  %vm705_vm3 = vcmp.gt.f32.partialorder %v704_v48, 0.0 }
 0x4b3   :  { %v707_v50 = vmul.f32 1.442695, %v706_v49 }
 0x4b5   :  { %1493 = vpow2.f32 %v707_v50 }
 0x4c2   :  { %v1494_v51 = vpop.eup %1493 }
 0x4c3   :  { %v1150_v52 = vadd.f32 -1.0, %v1494_v51 }
 0x4c5   :  { %v710_v53 = vsel %vm705_vm3, %v704_v48, %v1150_v52 }
 0x4c6   :  { %v728_v54 = vpack.c.bf16 %v710_v53, %v710_v53 }
 0x4c8   :  { %1370 = vmatmul.mubr.bf16.vlgmr.msra.gmra.mxu1 %v728_v54 }
 0x4c9   :  { %1409 = vmatprep.mubr.msk.bf16.mxu1 %vm1547_vm0, %v1546_v0  ;;  %1394 = vmatpush3.bf16.msra.mxu1 %v1475_v63 }
 0x4ca   :  { %1395 = vmatprep.subr.bf16.mxu1 %v1546_v0 }
 0x4cd   :  { %1396 = vmatpush3.bf16.msra.mxu1 %v1476_v1 }
 0x4ce   :  { %1397 = vmatprep.subr.bf16.mxu1 %v1546_v0 }
 0x4d1   :  { %1398 = vmatpush3.bf16.msra.mxu1 %v1477_v2 }
 0x4d2   :  { %1399 = vmatprep.subr.bf16.mxu1 %v1546_v0 }
 0x4d5   :  { %1400 = vmatpush3.bf16.msra.mxu1 %v1478_v3 }
 0x4d6   :  { %1401 = vmatprep.subr.bf16.mxu1 %v1546_v0 }
 0x4d9   :  { %1402 = vmatpush3.bf16.msra.mxu1 %v1479_v4 }
 0x4da   :  { %1403 = vmatprep.subr.bf16.mxu1 %v1546_v0 }
 0x4dd   :  { %1404 = vmatpush3.bf16.msra.mxu1 %v1480_v5 }
 0x4de   :  { %1405 = vmatprep.subr.bf16.mxu1 %v1546_v0 }
 0x4e1   :  { %1406 = vmatpush3.bf16.msra.mxu1 %v1481_v45 }
 0x4e2   :  { %1407 = vmatprep.subr.bf16.mxu1 %v1546_v0 }
 0x4e5   :  { %1408 = vmatpush3.bf16.msra.mxu1 %v1482_v46 }
 0x588   :  { %v815_v7 = vpop.f32.mrf.mxu1 }
 0x589   :  { %v816_v8 = vadd.f32 %v1151_v6, %v815_v7 }
 0x58a   :  { %v1371_v9 = vpop.f32.mrf.mxu1 }
 0x58b   :  { %v821_v10 = vrot.slane %v816_v8, 4  ;;  %v828_v11 = vmul.f32 %v816_v8, %v816_v8 }
 0x58c   :  { %v818_v12 = vpop.f32.mrf.mxu1 }
 0x58d   :  { %v822_v36 = vadd.f32 %v821_v10, %v816_v8  ;;  %v829_v13 = vrot.slane %v828_v11, 4 }
 0x58e   :  { %v1372_v14 = vpop.f32.mrf.mxu1 }
 0x58f   :  { %v823_v15 = vrot.slane %v822_v36, 2  ;;  %v830_v16 = vadd.f32 %v829_v13, %v828_v11 }
 0x591   :  { %v824_v17 = vadd.f32 %v823_v15, %v822_v36  ;;  %v831_v19 = vrot.slane %v830_v16, 2 }
 0x593   :  { %v825_v20 = vrot.slane %v824_v17, 1  ;;  %v832_v21 = vadd.f32 %v831_v19, %v830_v16 }
 0x595   :  { %v826_v22 = vadd.f32 %v825_v20, %v824_v17  ;;  %v833_v23 = vrot.slane %v832_v21, 1 }
 0x597   :  { %v827_v24 = vmul.f32 0.125, %v826_v22  ;;  %v834_v25 = vadd.f32 %v833_v23, %v832_v21 }
 0x599   :  { %v835_v26 = vmul.f32 0.125, %v834_v25  ;;  %v836_v27 = vmul.f32 %v827_v24, %v827_v24  ;;  %v839_v31 = vsub.f32 %v816_v8, %v827_v24 }
 0x59b   :  { %v837_v28 = vsub.f32 %v835_v26, %v836_v27 }
 0x59d   :  { %v838_v29 = vmax.f32 %v837_v28, 0.0 }
 0x59f   :  { %v840_v30 = vadd.f32 1e-05, %v838_v29 }
 0x5a1   :  { %1495 = vrsqrt.f32 %v840_v30 }
 0x5ae   :  { %v1496_v32 = vpop.eup %1495 }
 0x5af   :  { %v842_v34 = vmul.f32 %v1496_v32, %v839_v31 }
 0x5b1   :  { %v847_v37 = vmul.f32 %v1160_v33, %v842_v34 }
 0x5b3   :  { %v852_v38 = vadd.f32 %v1161_v35, %v847_v37 }
 0x5b5   :  { %v854_v39 = vmin.f32 %v852_v38, 0.0  ;;  %vm853_vm4 = vcmp.gt.f32.partialorder %v852_v38, 0.0 }
 0x5b7   :  { %v855_v40 = vmul.f32 1.442695, %v854_v39 }
 0x5b9   :  { %1497 = vpow2.f32 %v855_v40 }
 0x5c6   :  { %v1498_v41 = vpop.eup %1497 }
 0x5c7   :  { %v1162_v42 = vadd.f32 -1.0, %v1498_v41 }
 0x5c9   :  { %v858_v43 = vsel %vm853_vm4, %v852_v38, %v1162_v42 }
 0x5ca   :  { %v876_v44 = vpack.c.bf16 %v858_v43, %v858_v43 }
 0x5cc   :  { %1390 = vmatmul.mubr.bf16.vlgmr.msra.gmra.mxu0 %v876_v44 }
 0x68c   :  { %v963_v48 = vpop.f32.mrf.mxu0 }
 0x68d   :  { %v964_v49 = vadd.f32 %v1163_v47, %v963_v48 }
 0x68e   :  { %v1391_v50 = vpop.f32.mrf.mxu0 }
 0x68f   :  { %v969_v51 = vadd.f32 %v964_v49, %v1674_v18 }
 0x690   :  { %v966_v52 = vpop.f32.mrf.mxu0 }
 0x691   :  { %v988_v53 = vpack.c.bf16 %v969_v51, %v969_v51 }
 0x692   :  { %v1392_v54 = vpop.f32.mrf.mxu0 }
 0x693   :  { %1410 = vmatmul.mubr.bf16.vlgmr.msra.gmra.mxu1 %v988_v53 }
 0x753   :  { %v1075_v0 = vpop.f32.mrf.mxu1 }
 0x754   :  { %v1076_v56 = vadd.f32 %v1172_v55, %v1075_v0 }
 0x755   :  { %v1411_v57 = vpop.f32.mrf.mxu1 }
 0x756   :  { %1081 = vst [vmem:[#allocation5] sm:$0xff] %v1076_v56 }
 0x757   :  { %v1078_v58 = vpop.f32.mrf.mxu1 }
 0x758   :  { %1530 = shalt.err (!%p1527_p9)
}
 0x759   :  { %1091 = dma.vmem_to_hbm [thread:$0]  %s1089_s23, 128, %s1725_s3, [#allocation4]   ;;  %v1412_v18 = vpop.f32.mrf.mxu1 }
 0x75a   :  { %1541 = dma.done.wait [#allocation4], 128  }
 0x75b   :  { %1542 = vsyncadd [#allocation4], 4294967168 }
 0x75c   :  { %1095 = vsyncpa [#allocation3], 1 }
 0x75d   :  { %1096 = vsyncpa [#allocation4], 1 }

</bundles_post_ra>
